<compile_context>
chip_gen: v7x
topology: tpu7x:2x2x1
jax: 0.10.0
libtpu: 0.0.40
codegen_flags: <defaults>
</compile_context>

<pallas_src>
import functools

import jax
import jax.numpy as jnp
from jax.experimental import pallas as pl
from jax.experimental.pallas import tpu as pltpu


def _round_up(n, m):
    return ((n + m - 1) // m) * m


# ----------------------------------------------------------------------------
# Kernels
# ----------------------------------------------------------------------------
def _epilogue(h_acc_f32, b1, w2_bf16, b2, w3_bf16, b3, w4_row, b4_scalar, o_ref):
    """Layers 2-4 + sigmoid on a resident [TB, 256] f32 layer-1 accumulation."""
    h = jnp.maximum(h_acc_f32 + b1, 0.0)                       # ReLU (dropout = id)
    h = jnp.dot(h.astype(jnp.bfloat16), w2_bf16,
                preferred_element_type=jnp.float32)
    h = jnp.maximum(h + b2, 0.0)                               # ReLU (dropout = id)
    h = jnp.dot(h.astype(jnp.bfloat16), w3_bf16,
                preferred_element_type=jnp.float32)
    h = jnp.maximum(h + b3, 0.0)                               # ReLU
    # Linear(64, 1): VPU multiply + XLU lane reduce (skip an N=1 MXU matmul).
    logits = jnp.sum(h * w4_row, axis=-1, keepdims=True) + b4_scalar
    probs = jax.nn.sigmoid(logits)                             # (TB, 1)
    # Lane-dense store: broadcast across 128 lanes -> unmasked full-vreg vst.
    o_ref[...] = jnp.broadcast_to(probs, o_ref.shape).astype(o_ref.dtype)


def _mlp_kernel_ktiled(x_ref,
                       w1_ref, b1_ref,
                       w2_ref, b2_ref,
                       w3_ref, b3_ref,
                       w4_ref, b4_ref,
                       o_ref, acc_ref):
    k = pl.program_id(1)

    # ---- Layer 1: K-tiled [TB, TK] @ [TK, 256], f32 accumulation in VMEM ----
    @pl.when(k == 0)
    def _():
        acc_ref[...] = jnp.zeros_like(acc_ref)

    # In-kernel bf16 cast of the streamed f32 x tile (VPU work, hidden under
    # the w1/x DMA and MXU) -> halves no HBM traffic here but avoids the extra
    # host/XLA cast pass over x entirely.
    acc_ref[...] += jnp.dot(x_ref[...].astype(jnp.bfloat16), w1_ref[...],
                            preferred_element_type=jnp.float32)

    # ---- Layers 2-4 + sigmoid only once the K reduction is complete.
    # o_ref is resident across the (arbitrary) k axis: constant out index_map.
    @pl.when(k == pl.num_programs(1) - 1)
    def _():
        _epilogue(acc_ref[...], b1_ref[...], w2_ref[...], b2_ref[...],
                  w3_ref[...], b3_ref[...], w4_ref[...], b4_ref[0, 0], o_ref)


def _mlp_kernel_single(x_ref,
                       w1_ref, b1_ref,
                       w2_ref, b2_ref,
                       w3_ref, b3_ref,
                       w4_ref, b4_ref,
                       o_ref):
    # Single K step: no accumulator scratch RMW, no pl.when gating.
    h = jnp.dot(x_ref[...].astype(jnp.bfloat16), w1_ref[...],
                preferred_element_type=jnp.float32)
    _epilogue(h, b1_ref[...], w2_ref[...], b2_ref[...],
              w3_ref[...], b3_ref[...], w4_ref[...], b4_ref[0, 0], o_ref)


# ----------------------------------------------------------------------------
# Host-side wrappers
# ----------------------------------------------------------------------------
def prepare_params(params, *, tk_max=2048):
    """One-time weight prep (hoisted out of the per-call forward path):
    bf16 cast of the MXU operands and K-padding of w1 to a TK multiple.
    Use the same tk_max here and in movie_review_nn_forward."""
    V = params["w1"].shape[0]
    TK = min(tk_max, _round_up(V, 128))
    Vp = _round_up(V, TK)
    w1 = params["w1"].astype(jnp.bfloat16)
    if Vp != V:
        w1 = jnp.pad(w1, ((0, Vp - V), (0, 0)))   # zero rows -> exact results
    prepared = dict(params)
    prepared["w1"] = w1
    prepared["w2"] = params["w2"].astype(jnp.bfloat16)
    prepared["w3"] = params["w3"].astype(jnp.bfloat16)
    return prepared


def movie_review_nn_forward(x, params, *, tb_max=1024, tk_max=2048):
    """x: (B, V) float32.  params: raw f32 params or prepare_params() output.
    Returns (B, 1) f32 probabilities."""
    if params["w1"].dtype != jnp.bfloat16:
        # Fallback: prepare on the fly.  Prefer calling prepare_params() once
        # up front so the weight cast/pad is not redone every forward.
        params = prepare_params(params, tk_max=tk_max)

    B, V_in = x.shape
    Vp = params["w1"].shape[0]
    assert Vp >= V_in
    TK = min(tk_max, Vp)
    assert Vp % TK == 0, "prepare_params tk_max must match forward tk_max"
    nk = Vp // TK

    # Batch tiling: multiple of 8 sublanes; if one tile would cover the whole
    # batch but it can be split, halve TB so grid dim 0 has >= 2 tiles and the
    # "parallel" axis can megacore-shard on v7x.
    TB = min(tb_max, _round_up(B, 8))
    Bp = _round_up(B, TB)
    if Bp // TB < 2 and Bp >= 16:
        TB = _round_up(Bp // 2, 8)
        Bp = _round_up(B, TB)
    nb = Bp // TB

    # x stays f32 (the kernel casts tiles to bf16 in VMEM).  Pad only if the
    # shape is not already a tile multiple (no-op for aligned shapes).
    if Bp != B or Vp != V_in:
        x = jnp.pad(x, ((0, Bp - B), (0, Vp - V_in)))

    # Advisory cost estimate so XLA can overlap neighboring HLO with the call.
    flops = (2 * Bp * Vp * 256 + 2 * Bp * 256 * 128
             + 2 * Bp * 128 * 64 + 2 * Bp * 64)
    bytes_accessed = (Bp * Vp * 4                               # x (f32)
                      + (nb if nk > 1 else 1) * Vp * 256 * 2    # w1 (bf16)
                      + (256 * 128 + 128 * 64) * 2              # w2, w3 (bf16)
                      + (256 + 128 + 64 + 64 + 1) * 4           # biases, w4
                      + Bp * 128 * 4)                           # lane-dense out
    cost = pl.CostEstimate(flops=flops, transcendentals=Bp,
                           bytes_accessed=bytes_accessed)

    args = (x, params["w1"],
            params["b1"], params["w2"], params["b2"],
            params["w3"], params["b3"], params["w4"], params["b4"])
    out_shape = jax.ShapeDtypeStruct((Bp, 128), jnp.float32)
    small_specs_tail = [
        pl.BlockSpec(memory_space=pltpu.MemorySpace.SMEM),       # b4 scalar
    ]

    if nk == 1:
        # Single-K fast path: 1-D batch grid, w1 fully VMEM-resident.
        const = lambda i: (0, 0)
        grid_spec = pltpu.PrefetchScalarGridSpec(
            num_scalar_prefetch=0,
            grid=(nb,),
            in_specs=[
                pl.BlockSpec((TB, Vp), lambda i: (i, 0)),        # x (f32)
                pl.BlockSpec((Vp, 256), const),                  # w1 (bf16)
                pl.BlockSpec((1, 256), const),                   # b1
                pl.BlockSpec((256, 128), const),                 # w2 (bf16)
                pl.BlockSpec((1, 128), const),                   # b2
                pl.BlockSpec((128, 64), const),                  # w3 (bf16)
                pl.BlockSpec((1, 64), const),                    # b3
                pl.BlockSpec((1, 64), const),                    # w4 row
            ] + small_specs_tail,
            out_specs=pl.BlockSpec((TB, 128), lambda i: (i, 0)),
            scratch_shapes=[],
        )
        kernel = _mlp_kernel_single
        dim_sem = ("parallel",)
    else:
        # K-tiled path: (batch tiles, K tiles); layer-1 f32 accumulator scratch.
        const = lambda i, k: (0, 0)
        grid_spec = pltpu.PrefetchScalarGridSpec(
            num_scalar_prefetch=0,
            grid=(nb, nk),
            in_specs=[
                pl.BlockSpec((TB, TK), lambda i, k: (i, k)),     # x (f32, streamed)
                # Keep default depth-2 buffering; only deepen if an xprof trace
                # shows the w1 DMA exposed at these block sizes.
                pl.BlockSpec((TK, 256), lambda i, k: (k, 0)),    # w1 (bf16, streamed)
                pl.BlockSpec((1, 256), const),                   # b1
                pl.BlockSpec((256, 128), const),                 # w2 (bf16)
                pl.BlockSpec((1, 128), const),                   # b2
                pl.BlockSpec((128, 64), const),                  # w3 (bf16)
                pl.BlockSpec((1, 64), const),                    # b3
                pl.BlockSpec((1, 64), const),                    # w4 row
            ] + small_specs_tail,
            out_specs=pl.BlockSpec((TB, 128), lambda i, k: (i, 0)),
            scratch_shapes=[pltpu.VMEM((TB, 256), jnp.float32)],  # layer-1 acc
        )
        kernel = _mlp_kernel_ktiled
        dim_sem = ("parallel", "arbitrary")

    out = pl.pallas_call(
        kernel,
        out_shape=out_shape,
        grid_spec=grid_spec,
        compiler_params=pltpu.CompilerParams(
            dimension_semantics=dim_sem,
            # v5e scoped default is 16 MiB; v7x physical VMEM is 64 MiB.
            # TB=1024/TK=2048 double-buffered working set is ~20 MiB.
            vmem_limit_bytes=32 * 1024 * 1024,
        ),
        cost_estimate=cost,
    )(*args)

    return out[:B, :1]


# ----------------------------------------------------------------------------
# Init + reference + self-test
# ----------------------------------------------------------------------------
def init_params(key, vocab_size):
    """Deterministic synthetic init (shapes match the nn.Linear layers).

    Weights stored as (in, out) so the kernel does x @ W (== PyTorch x @ W.T).
    Layer-4 weight kept as a (1, 64) row for the in-kernel VPU reduce; its bias
    is a (1, 1) scalar held in SMEM."""
    dims = [(vocab_size, 256), (256, 128), (128, 64), (64, 1)]
    params = {}
    for idx, (fan_in, fan_out) in enumerate(dims, start=1):
        key, kw, kb = jax.random.split(key, 3)
        bound = 1.0 / (fan_in ** 0.5)
        w_shape = (fan_out, fan_in) if idx == 4 else (fan_in, fan_out)
        params[f"w{idx}"] = jax.random.uniform(
            kw, w_shape, jnp.float32, -bound, bound)
        params[f"b{idx}"] = jax.random.uniform(
            kb, (1, fan_out), jnp.float32, -bound, bound)
    return params


def _reference_forward(x, params):
    """Pure-JAX f32 reference (same math as the PyTorch module in eval mode)."""
    h = jnp.maximum(x @ params["w1"] + params["b1"], 0.0)
    h = jnp.maximum(h @ params["w2"] + params["b2"], 0.0)
    h = jnp.maximum(h @ params["w3"] + params["b3"], 0.0)
    logits = jnp.sum(h * params["w4"], axis=-1, keepdims=True) + params["b4"]
    return jax.nn.sigmoid(logits)


if __name__ == "__main__":
    key = jax.random.PRNGKey(0)
    key, kx, kp = jax.random.split(key, 3)

    batch = 8
    vocab_size = 512  # small synthetic bag-of-words vocab

    x = jax.random.uniform(kx, (batch, vocab_size), jnp.float32)
    params = init_params(kp, vocab_size)

    # One-time weight prep (bf16 cast + K pad), hoisted out of the forward.
    prepared = prepare_params(params)

    fwd = functools.partial(movie_review_nn_forward)
    out = fwd(x, prepared)
    out = jax.block_until_ready(out)

    assert out.shape == (batch, 1)
    assert bool(jnp.all((out >= 0.0) & (out <= 1.0)))

    # Verify against the f32 reference (tolerance covers the bf16 x/w casts).
    ref = _reference_forward(x, params)
    assert bool(jnp.allclose(out, ref, atol=5e-2)), "mismatch vs f32 reference"

    print("KERNEL_OK")
</pallas_src>

<mosaic_0001>
module attributes {stable_mosaic.version = 11 : i64} {
  func.func @_mlp_kernel_single(%arg0: i32, %arg1: memref<8x512xf32, #tpu.memory_space<vmem>>, %arg2: memref<512x256xbf16, #tpu.memory_space<vmem>>, %arg3: memref<1x256xf32, #tpu.memory_space<vmem>>, %arg4: memref<256x128xbf16, #tpu.memory_space<vmem>>, %arg5: memref<1x128xf32, #tpu.memory_space<vmem>>, %arg6: memref<128x64xbf16, #tpu.memory_space<vmem>>, %arg7: memref<1x64xf32, #tpu.memory_space<vmem>>, %arg8: memref<1x64xf32, #tpu.memory_space<vmem>>, %arg9: memref<1x1xf32, #tpu.memory_space<smem>>, %arg10: memref<8x128xf32, #tpu.memory_space<vmem>>) attributes {dimension_semantics = [#tpu.dimension_semantics<parallel>], iteration_bounds = array<i64: 1>, scalar_prefetch = 0 : i64, scratch_operands = 0 : i64, tpu.core_type = #tpu.core_type<tc>, window_params = [{transform_indices = @transform_0, window_bounds = array<i64: 8, 512>}, {pipeline_mode = #tpu.pipeline_mode<synchronous>, transform_indices = @transform_1, window_bounds = array<i64: 512, 256>}, {pipeline_mode = #tpu.pipeline_mode<synchronous>, transform_indices = @transform_2, window_bounds = array<i64: 1, 256>}, {pipeline_mode = #tpu.pipeline_mode<synchronous>, transform_indices = @transform_3, window_bounds = array<i64: 256, 128>}, {pipeline_mode = #tpu.pipeline_mode<synchronous>, transform_indices = @transform_4, window_bounds = array<i64: 1, 128>}, {pipeline_mode = #tpu.pipeline_mode<synchronous>, transform_indices = @transform_5, window_bounds = array<i64: 128, 64>}, {pipeline_mode = #tpu.pipeline_mode<synchronous>, transform_indices = @transform_6, window_bounds = array<i64: 1, 64>}, {pipeline_mode = #tpu.pipeline_mode<synchronous>, transform_indices = @transform_7, window_bounds = array<i64: 1, 64>}, {transform_indices = @transform_8, window_bounds = array<i64: 1, 1>}, {transform_indices = @transform_9, window_bounds = array<i64: 8, 128>}]} {
    %c0 = arith.constant 0 : index
    %c0_0 = arith.constant 0 : index
    %0 = vector.load %arg1[%c0, %c0_0] : memref<8x512xf32, #tpu.memory_space<vmem>>, vector<8x512xf32>
    %1 = arith.truncf %0 : vector<8x512xf32> to vector<8x512xbf16>
    %c0_1 = arith.constant 0 : index
    %c0_2 = arith.constant 0 : index
    %2 = vector.load %arg2[%c0_1, %c0_2] : memref<512x256xbf16, #tpu.memory_space<vmem>>, vector<512x256xbf16>
    %cst = arith.constant dense<0.000000e+00> : vector<8x256xf32>
    %3 = tpu.matmul %1, %2, %cst {dimension_numbers = #tpu.dot_dimension_numbers<[1], [0], [0], [1], [0, 0, 1, 1], [], []>} : vector<8x512xbf16>, vector<512x256xbf16>, vector<8x256xf32> -> vector<8x256xf32>
    %c0_3 = arith.constant 0 : index
    %c0_4 = arith.constant 0 : index
    %4 = vector.load %arg3[%c0_3, %c0_4] : memref<1x256xf32, #tpu.memory_space<vmem>>, vector<1x256xf32>
    %c0_5 = arith.constant 0 : index
    %c0_6 = arith.constant 0 : index
    %5 = vector.load %arg4[%c0_5, %c0_6] : memref<256x128xbf16, #tpu.memory_space<vmem>>, vector<256x128xbf16>
    %c0_7 = arith.constant 0 : index
    %c0_8 = arith.constant 0 : index
    %6 = vector.load %arg5[%c0_7, %c0_8] : memref<1x128xf32, #tpu.memory_space<vmem>>, vector<1x128xf32>
    %c0_9 = arith.constant 0 : index
    %c0_10 = arith.constant 0 : index
    %7 = vector.load %arg6[%c0_9, %c0_10] : memref<128x64xbf16, #tpu.memory_space<vmem>>, vector<128x64xbf16>
    %c0_11 = arith.constant 0 : index
    %c0_12 = arith.constant 0 : index
    %8 = vector.load %arg7[%c0_11, %c0_12] : memref<1x64xf32, #tpu.memory_space<vmem>>, vector<1x64xf32>
    %c0_13 = arith.constant 0 : index
    %c0_14 = arith.constant 0 : index
    %9 = vector.load %arg8[%c0_13, %c0_14] : memref<1x64xf32, #tpu.memory_space<vmem>>, vector<1x64xf32>
    %c0_15 = arith.constant 0 : index
    %c0_16 = arith.constant 0 : index
    %10 = memref.load %arg9[%c0_15, %c0_16] : memref<1x1xf32, #tpu.memory_space<smem>>
    %11 = vector.broadcast %4 : vector<1x256xf32> to vector<8x256xf32>
    %12 = arith.addf %3, %11 : vector<8x256xf32>
    %cst_17 = arith.constant 0.000000e+00 : f32
    %13 = vector.broadcast %cst_17 : f32 to vector<8x256xf32>
    %14 = arith.maximumf %12, %13 : vector<8x256xf32>
    %15 = arith.truncf %14 : vector<8x256xf32> to vector<8x256xbf16>
    %cst_18 = arith.constant dense<0.000000e+00> : vector<8x128xf32>
    %16 = tpu.matmul %15, %5, %cst_18 {dimension_numbers = #tpu.dot_dimension_numbers<[1], [0], [0], [1], [0, 0, 1, 1], [], []>} : vector<8x256xbf16>, vector<256x128xbf16>, vector<8x128xf32> -> vector<8x128xf32>
    %17 = vector.broadcast %6 : vector<1x128xf32> to vector<8x128xf32>
    %18 = arith.addf %16, %17 : vector<8x128xf32>
    %cst_19 = arith.constant 0.000000e+00 : f32
    %19 = vector.broadcast %cst_19 : f32 to vector<8x128xf32>
    %20 = arith.maximumf %18, %19 : vector<8x128xf32>
    %21 = arith.truncf %20 : vector<8x128xf32> to vector<8x128xbf16>
    %cst_20 = arith.constant dense<0.000000e+00> : vector<8x64xf32>
    %22 = tpu.matmul %21, %7, %cst_20 {dimension_numbers = #tpu.dot_dimension_numbers<[1], [0], [0], [1], [0, 0, 1, 1], [], []>} : vector<8x128xbf16>, vector<128x64xbf16>, vector<8x64xf32> -> vector<8x64xf32>
    %23 = vector.broadcast %8 : vector<1x64xf32> to vector<8x64xf32>
    %24 = arith.addf %22, %23 : vector<8x64xf32>
    %cst_21 = arith.constant 0.000000e+00 : f32
    %25 = vector.broadcast %cst_21 : f32 to vector<8x64xf32>
    %26 = arith.maximumf %24, %25 : vector<8x64xf32>
    %27 = vector.broadcast %9 : vector<1x64xf32> to vector<8x64xf32>
    %28 = arith.mulf %26, %27 : vector<8x64xf32>
    %cst_22 = arith.constant dense<0.000000e+00> : vector<8xf32>
    %29 = vector.multi_reduction <add>, %28, %cst_22 [1] : vector<8x64xf32> to vector<8xf32>
    %30 = vector.shape_cast %29 : vector<8xf32> to vector<8x1xf32>
    %31 = vector.broadcast %10 : f32 to vector<8x1xf32>
    %32 = arith.addf %30, %31 : vector<8x1xf32>
    %33 = arith.negf %32 : vector<8x1xf32>
    %34 = math.exp %33 : vector<8x1xf32>
    %cst_23 = arith.constant 1.000000e+00 : f32
    %35 = vector.broadcast %cst_23 : f32 to vector<8x1xf32>
    %36 = arith.addf %35, %34 : vector<8x1xf32>
    %37 = arith.divf %35, %36 : vector<8x1xf32>
    %38 = vector.shape_cast %37 : vector<8x1xf32> to vector<8x1xf32>
    %39 = vector.broadcast %38 : vector<8x1xf32> to vector<8x128xf32>
    %c0_24 = arith.constant 0 : index
    %c0_25 = arith.constant 0 : index
    %40 = vector.load %arg10[%c0_24, %c0_25] : memref<8x128xf32, #tpu.memory_space<vmem>>, vector<8x128xf32>
    tpu.vector_store %arg10[%c0_24, %c0_25], %39 {strides = array<i32>} : memref<8x128xf32, #tpu.memory_space<vmem>>, vector<8x128xf32>,
    return
  }
  func.func @transform_0(%arg0: i32) -> (i32, i32) {
    %c0_i32 = arith.constant 0 : i32
    %c0_i32_0 = arith.constant 0 : i32
    return %arg0, %c0_i32 : i32, i32
  }
  func.func @transform_1(%arg0: i32) -> (i32, i32) {
    %c0_i32 = arith.constant 0 : i32
    %c0_i32_0 = arith.constant 0 : i32
    %c0_i32_1 = arith.constant 0 : i32
    return %c0_i32, %c0_i32_0 : i32, i32
  }
  func.func @transform_2(%arg0: i32) -> (i32, i32) {
    %c0_i32 = arith.constant 0 : i32
    %c0_i32_0 = arith.constant 0 : i32
    %c0_i32_1 = arith.constant 0 : i32
    return %c0_i32, %c0_i32_0 : i32, i32
  }
  func.func @transform_3(%arg0: i32) -> (i32, i32) {
    %c0_i32 = arith.constant 0 : i32
    %c0_i32_0 = arith.constant 0 : i32
    %c0_i32_1 = arith.constant 0 : i32
    return %c0_i32, %c0_i32_0 : i32, i32
  }
  func.func @transform_4(%arg0: i32) -> (i32, i32) {
    %c0_i32 = arith.constant 0 : i32
    %c0_i32_0 = arith.constant 0 : i32
    %c0_i32_1 = arith.constant 0 : i32
    return %c0_i32, %c0_i32_0 : i32, i32
  }
  func.func @transform_5(%arg0: i32) -> (i32, i32) {
    %c0_i32 = arith.constant 0 : i32
    %c0_i32_0 = arith.constant 0 : i32
    %c0_i32_1 = arith.constant 0 : i32
    return %c0_i32, %c0_i32_0 : i32, i32
  }
  func.func @transform_6(%arg0: i32) -> (i32, i32) {
    %c0_i32 = arith.constant 0 : i32
    %c0_i32_0 = arith.constant 0 : i32
    %c0_i32_1 = arith.constant 0 : i32
    return %c0_i32, %c0_i32_0 : i32, i32
  }
  func.func @transform_7(%arg0: i32) -> (i32, i32) {
    %c0_i32 = arith.constant 0 : i32
    %c0_i32_0 = arith.constant 0 : i32
    %c0_i32_1 = arith.constant 0 : i32
    return %c0_i32, %c0_i32_0 : i32, i32
  }
  func.func @transform_8(%arg0: i32) -> (i32, i32) {
    %c0_i32 = arith.constant 0 : i32
    %c0_i32_0 = arith.constant 0 : i32
    %c0_i32_1 = arith.constant 0 : i32
    return %c0_i32, %c0_i32_0 : i32, i32
  }
  func.func @transform_9(%arg0: i32) -> (i32, i32) {
    %c0_i32 = arith.constant 0 : i32
    %c0_i32_0 = arith.constant 0 : i32
    return %arg0, %c0_i32 : i32, i32
  }
}

</mosaic_0001>

<bundles_post_ra>
// kernel: tpu_custom_call.1
= control target key start
LH: loop header
LB: loop body
LE: loop exit
PB: predicated region body
PF: predicated region fallthrough
CT: control target
= control target key end

     0   :  { %15 = vsyncpa [#allocation4], 0  ;;  %s1380_s0 = inlined_call_operand.vmem [shape: f32[8,512], index: 0, kind: input, shape index: {}]   ;;  %s1381_s1 = inlined_call_operand.hbm [shape: bf16[512,256], index: 1, kind: input, shape index: {}]   ;;  %s1382_s2 = inlined_call_operand.vmem [shape: f32[1,256], index: 2, kind: input, shape index: {}]   ;;  %s1383_s3 = inlined_call_operand.hbm [shape: bf16[256,128], index: 3, kind: input, shape index: {}]   ;;  %s1384_s4 = inlined_call_operand.vmem [shape: f32[1,128], index: 4, kind: input, shape index: {}]   ;;  %s1385_s5 = inlined_call_operand.vmem [shape: bf16[128,64], index: 5, kind: input, shape index: {}]   ;;  %s1386_s6 = inlined_call_operand.vmem [shape: f32[1,64], index: 6, kind: input, shape index: {}]   ;;  %s1387_s7 = inlined_call_operand.vmem [shape: f32[1,64], index: 7, kind: input, shape index: {}]   ;;  %s1388_s8 = inlined_call_operand.<no memory space> [shape: f32[1,1], index: 8, kind: input, shape index: {}]   ;;  %s1389_s9 = inlined_call_operand.hbm [shape: f32[8,128], index: 9, kind: output, shape index: {}]  }
   0x1   :  { %16 = vsyncpa [#allocation7], 0 }
   0x2   :  { %17 = vsyncpa [#allocation5], 0  ;;  %s1234_s30 = smov [#allocation3]   ;;  %s1162_s13 = scalar_lea.hbm %s1381_s1, 8192 }
   0x3   :  { %s25_s10 = sshll.u32 %s1234_s30, 4  ;;  %p1163_p0 = scmp.ne.s32.totalorder %s1381_s1, %s1162_s13  ;;  %s26_s10 = int_to_ptr.vmem [resolvable:$true] %s25_s10 }
   0x4   :  { %p1166_p1 = scmp.lt.u32.totalorder %s1162_s13, %s1381_s1 }
   0x6   :  { %p1168_p2 = pnand %p1166_p1, %p1163_p0 }
   0x8   :  { %1171 = shalt.err (!%p1168_p2)
}
   0x9   :  { %s1172_s18 = scalar_lea.vmem %s26_s10, 8192  ;;  %p1177_p4 = scmp.lt.s32.totalorder %s26_s10, %s26_s10 }
   0xa   :  { %p1173_p3 = scmp.ne.s32.totalorder %s26_s10, %s1172_s18  ;;  %p1178_p5 = scmp.lt.s32.totalorder %s1172_s18, %s1172_s18 }
   0xc   :  { %p1179_p6 = por %p1178_p5, %p1177_p4 }
   0xe   :  { %p1180_p7 = pnand %p1179_p6, %p1173_p3 }
  0x10   :  { %1183 = shalt.err (!%p1180_p7)
}
  0x11   :  { %s1235_s19 = smov 128   ;;  %s1236_s20 = smov 8  }
  0x12   :  { %31 = dma.hbm_to_vmem [thread:$0]  %s1381_s1, 8192, %s26_s10, [#allocation4], %s1235_s19, %s1235_s19, %s1236_s20  }
  0x13   :  { %s1237_s23 = smov [#allocation6]   ;;  %s1184_s27 = scalar_lea.hbm %s1383_s3, 2048 }
  0x14   :  { %s39_s24 = sshll.u32 %s1237_s23, 4  ;;  %p1185_p8 = scmp.ne.s32.totalorder %s1383_s3, %s1184_s27  ;;  %s40_s24 = int_to_ptr.vmem [resolvable:$true] %s39_s24 }
  0x15   :  { %p1188_p9 = scmp.lt.u32.totalorder %s1184_s27, %s1383_s3 }
  0x17   :  { %p1190_p10 = pnand %p1188_p9, %p1185_p8 }
  0x19   :  { %1193 = shalt.err (!%p1190_p10)
}
  0x1a   :  { %s1194_s12 = scalar_lea.vmem %s40_s24, 2048  ;;  %p1199_p12 = scmp.lt.s32.totalorder %s40_s24, %s40_s24 }
  0x1b   :  { %p1195_p11 = scmp.ne.s32.totalorder %s40_s24, %s1194_s12  ;;  %p1200_p13 = scmp.lt.s32.totalorder %s1194_s12, %s1194_s12 }
  0x1d   :  { %p1201_p0 = por %p1200_p13, %p1199_p12 }
  0x1f   :  { %p1202_p1 = pnand %p1201_p0, %p1195_p11 }
  0x21   :  { %1205 = shalt.err (!%p1202_p1)
}
  0x22   :  { %s1238_s1 = smov 64   ;;  %s1239_s10 = smov 4  }
  0x23   :  { %45 = dma.hbm_to_vmem [thread:$0]  %s1383_s3, 2048, %s40_s24, [#allocation7], %s1238_s1, %s1238_s1, %s1239_s10  }
  0x24   :  { %1228 = dma.done.wait [#allocation4], 8192  }
  0x25   :  { %1229 = vsyncadd [#allocation4], 4294959104 }
  0x26   :  { %1230 = dma.done.wait [#allocation7], 2048  }
  0x27   :  { %1231 = vsyncadd [#allocation7], 4294965248  ;;  %v1038_v0 = vld [vmem:[#allocation3 + $0x4] ss:$8 sps:$4 sm:$0xff]   ;;  %v1040_v1 = vld [vmem:[#allocation3] ss:$8 sps:$4 sm:$0xff]  }
  0x28   :  { %519 = vmatprep.subr.bf16.mxu0 %v1038_v0  ;;  %v1041_v2 = vld [vmem:[#allocation3 + $0x14] ss:$8 sps:$4 sm:$0xff]   ;;  %v1043_v3 = vld [vmem:[#allocation3 + $0x10] ss:$8 sps:$4 sm:$0xff]   ;;  %v1044_v4 = vld [vmem:[#allocation3 + $0x24] ss:$8 sps:$4 sm:$0xff]  }
  0x29   :  { %520 = vmatpush1.bf16.msra.mxu0 %v1040_v1  ;;  %v1046_v5 = vld [vmem:[#allocation3 + $0x20] ss:$8 sps:$4 sm:$0xff]   ;;  %v1047_v6 = vld [vmem:[#allocation3 + $0x34] ss:$8 sps:$4 sm:$0xff]   ;;  %v1049_v7 = vld [vmem:[#allocation3 + $0x30] ss:$8 sps:$4 sm:$0xff]  }
  0x2a   :  { %521 = vmatprep.subr.bf16.mxu0 %v1041_v2  ;;  %v1050_v8 = vld [vmem:[#allocation3 + $0x44] ss:$8 sps:$4 sm:$0xff]   ;;  %v1052_v9 = vld [vmem:[#allocation3 + $0x40] ss:$8 sps:$4 sm:$0xff]   ;;  %v1053_v10 = vld [vmem:[#allocation3 + $0x54] ss:$8 sps:$4 sm:$0xff]  }
  0x2b   :  { %v1055_v11 = vld [vmem:[#allocation3 + $0x50] ss:$8 sps:$4 sm:$0xff]   ;;  %v1056_v12 = vld [vmem:[#allocation3 + $0x64] ss:$8 sps:$4 sm:$0xff]   ;;  %v1058_v15 = vld [vmem:[#allocation3 + $0x60] ss:$8 sps:$4 sm:$0xff]  }
  0x2c   :  { %v64_v13 = vld [vmem:[%s1380_s0 + $0x8] sm:$0xff]  ;;  %v1059_v16 = vld [vmem:[#allocation3 + $0x74] ss:$8 sps:$4 sm:$0xff]   ;;  %v1061_v17 = vld [vmem:[#allocation3 + $0x70] ss:$8 sps:$4 sm:$0xff]   ;;  %vm1241_vm0 = vmmov 0  }
  0x2d   :  { %522 = vmatpush1.bf16.msra.mxu0 %v1043_v3  ;;  %v68_v14 = vpack.c.bf16 %v64_v13, %v64_v13  ;;  %v1062_v18 = vld [vmem:[#allocation3 + $0x84] ss:$8 sps:$4 sm:$0xff]   ;;  %v1064_v19 = vld [vmem:[#allocation3 + $0x80] ss:$8 sps:$4 sm:$0xff]   ;;  %v1065_v20 = vld [vmem:[#allocation3 + $0x94] ss:$8 sps:$4 sm:$0xff]  }
  0x2e   :  { %523 = vmatprep.subr.bf16.mxu0 %v1044_v4  ;;  %v1067_v21 = vld [vmem:[#allocation3 + $0x90] ss:$8 sps:$4 sm:$0xff]   ;;  %v1068_v22 = vld [vmem:[#allocation3 + $0xa4] ss:$8 sps:$4 sm:$0xff]   ;;  %v1070_v23 = vld [vmem:[#allocation3 + $0xa0] ss:$8 sps:$4 sm:$0xff]  }
  0x2f   :  { %551 = vmatprep.mubr.bf16.mxu0 %v68_v14  ;;  %v1071_v24 = vld [vmem:[#allocation3 + $0xb4] ss:$8 sps:$4 sm:$0xff]   ;;  %v1073_v25 = vld [vmem:[#allocation3 + $0xb0] ss:$8 sps:$4 sm:$0xff]   ;;  %v1074_v26 = vld [vmem:[#allocation3 + $0xc4] ss:$8 sps:$4 sm:$0xff]  }
  0x30   :  { %v1134_v27 = vld [vmem:[#allocation6 + $0x40] sm:$0xff]   ;;  %v1077_v30 = vld [vmem:[#allocation3 + $0xd4] ss:$8 sps:$4 sm:$0xff]   ;;  %v1136_v31 = vld [vmem:[#allocation6 + $0x48] sm:$0xff]   ;;  %vm851_vm1 = vcmask 523264  }
  0x31   :  { %524 = vmatpush1.bf16.msra.mxu0 %v1046_v5  ;;  %v1076_v28 = vld [vmem:[#allocation3 + $0xc0] ss:$8 sps:$4 sm:$0xff]   ;;  %972 = vmatprep.subr.bf16.mxu1 %v1134_v27  ;;  %v1138_v33 = vld [vmem:[#allocation6 + $0x50] sm:$0xff]   ;;  %v1080_v35 = vld [vmem:[#allocation3 + $0xe4] ss:$8 sps:$4 sm:$0xff]  }
  0x32   :  { %525 = vmatprep.subr.bf16.mxu0 %v1047_v6  ;;  %v1135_v29 = vld [vmem:[#allocation6] sm:$0xff]   ;;  %v1137_v32 = vld [vmem:[#allocation6 + $0x8] sm:$0xff]   ;;  %v1079_v34 = vld [vmem:[#allocation3 + $0xd0] ss:$8 sps:$4 sm:$0xff]  }
  0x33   :  { %973 = vmatpush3.bf16.msra.mxu1 %v1135_v29  ;;  %v1139_v36 = vld [vmem:[#allocation6 + $0x10] sm:$0xff]   ;;  %v1140_v37 = vld [vmem:[#allocation6 + $0x58] sm:$0xff]   ;;  %v1082_v38 = vld [vmem:[#allocation3 + $0xe0] ss:$8 sps:$4 sm:$0xff]  }
  0x34   :  { %974 = vmatprep.subr.bf16.mxu1 %v1136_v31  ;;  %v1083_v39 = vld [vmem:[#allocation3 + $0xf4] ss:$8 sps:$4 sm:$0xff]   ;;  %v1142_v41 = vld [vmem:[#allocation6 + $0x60] sm:$0xff]   ;;  %v1085_v42 = vld [vmem:[#allocation3 + $0xf0] ss:$8 sps:$4 sm:$0xff]  }
  0x35   :  { %526 = vmatpush1.bf16.msra.mxu0 %v1049_v7  ;;  %v1141_v40 = vld [vmem:[#allocation6 + $0x18] sm:$0xff]   ;;  %v63_v43 = vld [vmem:[%s1380_s0] sm:$0xff]  ;;  %v1144_v47 = vld [vmem:[#allocation6 + $0x68] sm:$0xff]  }
  0x36   :  { %527 = vmatprep.subr.bf16.mxu0 %v1050_v8  ;;  %v1143_v44 = vld [vmem:[#allocation6 + $0x20] sm:$0xff]   ;;  %v66_v46 = vld [vmem:[%s1380_s0 + $0x18] sm:$0xff]  ;;  %v67_v49 = vpack.c.bf16 %v63_v43, %v63_v43  ;;  %v1145_v52 = vld [vmem:[#allocation6 + $0x28] sm:$0xff]  }
  0x37   :  { %975 = vmatpush3.bf16.msra.mxu1 %v1137_v32  ;;  %v1088_v45 = vld [vmem:[#allocation3 + $0x104] ss:$8 sps:$4 sm:$0xff]   ;;  %v1086_v48 = vld [vmem:[#allocation3 + $0x100] ss:$8 sps:$4 sm:$0xff]   ;;  %v70_v50 = vpack.c.bf16 %v66_v46, %v66_v46  ;;  %v1091_v51 = vld [vmem:[#allocation3 + $0x114] ss:$8 sps:$4 sm:$0xff]  }
  0x38   :  { %976 = vmatprep.subr.bf16.mxu1 %v1138_v33  ;;  %v1089_v53 = vld [vmem:[#allocation3 + $0x110] ss:$8 sps:$4 sm:$0xff]   ;;  %v1094_v54 = vld [vmem:[#allocation3 + $0x124] ss:$8 sps:$4 sm:$0xff]   ;;  %v1092_v55 = vld [vmem:[#allocation3 + $0x120] ss:$8 sps:$4 sm:$0xff]  }
  0x39   :  { %528 = vmatpush1.bf16.msra.mxu0 %v1052_v9  ;;  %v1097_v56 = vld [vmem:[#allocation3 + $0x134] ss:$8 sps:$4 sm:$0xff]   ;;  %v1095_v57 = vld [vmem:[#allocation3 + $0x130] ss:$8 sps:$4 sm:$0xff]   ;;  %v1100_v58 = vld [vmem:[#allocation3 + $0x144] ss:$8 sps:$4 sm:$0xff]  }
  0x3a   :  { %529 = vmatprep.subr.bf16.mxu0 %v1053_v10  ;;  %v1098_v59 = vld [vmem:[#allocation3 + $0x140] ss:$8 sps:$4 sm:$0xff]   ;;  %v1103_v60 = vld [vmem:[#allocation3 + $0x154] ss:$8 sps:$4 sm:$0xff]   ;;  %v1101_v61 = vld [vmem:[#allocation3 + $0x150] ss:$8 sps:$4 sm:$0xff]  }
  0x3b   :  { %977 = vmatpush3.bf16.msra.mxu1 %v1139_v36  ;;  %v1106_v62 = vld [vmem:[#allocation3 + $0x164] ss:$8 sps:$4 sm:$0xff]   ;;  %v1104_v63 = vld [vmem:[#allocation3 + $0x160] ss:$8 sps:$4 sm:$0xff]   ;;  %v1109_v0 = vld [vmem:[#allocation3 + $0x174] ss:$8 sps:$4 sm:$0xff]  }
  0x3c   :  { %978 = vmatprep.subr.bf16.mxu1 %v1140_v37  ;;  %v1107_v1 = vld [vmem:[#allocation3 + $0x170] ss:$8 sps:$4 sm:$0xff]   ;;  %v1112_v2 = vld [vmem:[#allocation3 + $0x184] ss:$8 sps:$4 sm:$0xff]   ;;  %v1110_v3 = vld [vmem:[#allocation3 + $0x180] ss:$8 sps:$4 sm:$0xff]  }
  0x3d   :  { %530 = vmatpush1.bf16.msra.mxu0 %v1055_v11  ;;  %v1115_v4 = vld [vmem:[#allocation3 + $0x194] ss:$8 sps:$4 sm:$0xff]   ;;  %v1113_v5 = vld [vmem:[#allocation3 + $0x190] ss:$8 sps:$4 sm:$0xff]   ;;  %v1118_v6 = vld [vmem:[#allocation3 + $0x1a4] ss:$8 sps:$4 sm:$0xff]  }
  0x3e   :  { %531 = vmatprep.subr.bf16.mxu0 %v1056_v12  ;;  %v1116_v7 = vld [vmem:[#allocation3 + $0x1a0] ss:$8 sps:$4 sm:$0xff]   ;;  %v1121_v8 = vld [vmem:[#allocation3 + $0x1b4] ss:$8 sps:$4 sm:$0xff]   ;;  %v1119_v9 = vld [vmem:[#allocation3 + $0x1b0] ss:$8 sps:$4 sm:$0xff]  }
  0x3f   :  { %979 = vmatpush3.bf16.msra.mxu1 %v1141_v40  ;;  %v1124_v10 = vld [vmem:[#allocation3 + $0x1c4] ss:$8 sps:$4 sm:$0xff]   ;;  %v1122_v11 = vld [vmem:[#allocation3 + $0x1c0] ss:$8 sps:$4 sm:$0xff]   ;;  %v1127_v12 = vld [vmem:[#allocation3 + $0x1d4] ss:$8 sps:$4 sm:$0xff]  }
  0x40   :  { %980 = vmatprep.subr.bf16.mxu1 %v1142_v41  ;;  %v1125_v13 = vld [vmem:[#allocation3 + $0x1d0] ss:$8 sps:$4 sm:$0xff]   ;;  %v1130_v14 = vld [vmem:[#allocation3 + $0x1e4] ss:$8 sps:$4 sm:$0xff]  }
  0x41   :  { %532 = vmatpush1.bf16.msra.mxu0 %v1058_v15  ;;  %v1128_v15 = vld [vmem:[#allocation3 + $0x1e0] ss:$8 sps:$4 sm:$0xff]  }
  0x42   :  { %533 = vmatprep.subr.bf16.mxu0 %v1059_v16  ;;  %v1133_v16 = vld [vmem:[#allocation3 + $0x1f4] ss:$8 sps:$4 sm:$0xff]   ;;  %v1150_v41 = vld [vmem:[%s1385_s5] sm:$0xff]   ;;  %v1151_v43 = vld [vmem:[%s1385_s5 + $0x8] sm:$0xff]  }
  0x43   :  { %981 = vmatpush3.bf16.msra.mxu1 %v1143_v44  ;;  %v1152_v44 = vld [vmem:[%s1385_s5 + $0x10] sm:$0xff]   ;;  %v1154_v46 = vld [vmem:[%s1385_s5 + $0x20] sm:$0xff]  }
  0x44   :  { %982 = vmatprep.subr.bf16.mxu1 %v1144_v47  ;;  %v1155_v47 = vld [vmem:[%s1385_s5 + $0x28] sm:$0xff]  }
  0x45   :  { %534 = vmatpush1.bf16.msra.mxu0 %v1061_v17  ;;  %v1131_v17 = vld [vmem:[#allocation3 + $0x1f0] ss:$8 sps:$4 sm:$0xff]  }
  0x46   :  { %535 = vmatprep.subr.bf16.mxu0 %v1062_v18  ;;  %v65_v18 = vld [vmem:[%s1380_s0 + $0x10] sm:$0xff] }
  0x47   :  { %983 = vmatpush3.bf16.msra.mxu1 %v1145_v52 }
  0x49   :  { %536 = vmatpush1.bf16.msra.mxu0 %v1064_v19  ;;  %v69_v19 = vpack.c.bf16 %v65_v18, %v65_v18 }
  0x4a   :  { %537 = vmatprep.subr.bf16.mxu0 %v1065_v20  ;;  %v1146_v20 = vld [vmem:[#allocation6 + $0x70] sm:$0xff]  }
  0x4b   :  { %984 = vmatprep.subr.bf16.mxu1 %v1146_v20 }
  0x4d   :  { %538 = vmatpush1.bf16.msra.mxu0 %v1067_v21  ;;  %v1147_v21 = vld [vmem:[#allocation6 + $0x30] sm:$0xff]  }
  0x4e   :  { %539 = vmatprep.subr.bf16.mxu0 %v1068_v22  ;;  %985 = vmatpush3.bf16.msra.mxu1 %v1147_v21  ;;  %v1148_v22 = vld [vmem:[#allocation6 + $0x78] sm:$0xff]  }
  0x4f   :  { %986 = vmatprep.subr.bf16.mxu1 %v1148_v22 }
  0x51   :  { %540 = vmatpush1.bf16.msra.mxu0 %v1070_v23  ;;  %v1149_v23 = vld [vmem:[#allocation6 + $0x38] sm:$0xff]  }
  0x52   :  { %541 = vmatprep.subr.bf16.mxu0 %v1071_v24  ;;  %987 = vmatpush3.bf16.msra.mxu1 %v1149_v23  ;;  %v1240_v24 = vmov 0.0  }
  0x53   :  { %1003 = vmatprep.subr.bf16.mxu1 %v1240_v24 }
  0x55   :  { %542 = vmatpush1.bf16.msra.mxu0 %v1073_v25  ;;  %v189_v25 = vlaneseq }
  0x56   :  { %543 = vmatprep.subr.bf16.mxu0 %v1074_v26 }
  0x57   :  { %v190_v26 = vshrl.u32 %v189_v25, 7 }
  0x59   :  { %544 = vmatpush1.bf16.msra.mxu0 %v1076_v28  ;;  %v191_v27 = vsub.s32 0, %v190_v26  ;;  %v135_v28 = vld [vmem:[%s1382_s2] sm:$0x3]  ;;  %v195_v29 = vsub.s32 1, %v190_v26 }
  0x5a   :  { %545 = vmatprep.subr.bf16.mxu0 %v1077_v30 }
  0x5b   :  { %v192_v30 = vrot.slane %v135_v28, %v191_v27  ;;  %v196_v31 = vrot.slane %v135_v28, %v195_v29 }
  0x5d   :  { %546 = vmatpush1.bf16.msra.mxu0 %v1079_v34 }
  0x5e   :  { %547 = vmatprep.subr.bf16.mxu0 %v1080_v35 }
  0x61   :  { %548 = vmatpush1.bf16.msra.mxu0 %v1082_v38 }
  0x62   :  { %549 = vmatprep.subr.bf16.mxu0 %v1083_v39 }
  0x65   :  { %550 = vmatpush1.bf16.msra.mxu0 %v1085_v42 }
  0x66   :  { %560 = vmatprep.subr.bf16.mxu0 %v1088_v45  ;;  %v1153_v45 = vld [vmem:[%s1385_s5 + $0x18] sm:$0xff]  }
  0x68   :  { %552 = vmatmul.mubr.bf16.vlgmr.msra.gmra.mrb[0].mxu0 %v67_v49  ;;  %v1157_v49 = vld [vmem:[%s1385_s5 + $0x38] sm:$0xff]  }
  0x69   :  { %561 = vmatpush1.bf16.msra.mxu0 %v1086_v48  ;;  %592 = vmatprep.mubr.bf16.mxu0 %v70_v50  ;;  %v1156_v48 = vld [vmem:[%s1385_s5 + $0x30] sm:$0xff]  }
  0x6a   :  { %562 = vmatprep.subr.bf16.mxu0 %v1091_v51  ;;  %v944_v51 = vld [vmem:[%s1384_s4] ss:$0 sm:$0xff] }
  0x6d   :  { %563 = vmatpush1.bf16.msra.mxu0 %v1089_v53 }
  0x6e   :  { %564 = vmatprep.subr.bf16.mxu0 %v1094_v54 }
  0x71   :  { %565 = vmatpush1.bf16.msra.mxu0 %v1092_v55 }
  0x72   :  { %566 = vmatprep.subr.bf16.mxu0 %v1097_v56 }
  0x75   :  { %567 = vmatpush1.bf16.msra.mxu0 %v1095_v57 }
  0x76   :  { %568 = vmatprep.subr.bf16.mxu0 %v1100_v58 }
  0x79   :  { %569 = vmatpush1.bf16.msra.mxu0 %v1098_v59  ;;  %v961_v59 = vld [vmem:[%s1386_s6] ss:$0 sm:$0xff]  ;;  %s1242_s6 = smov [#allocation8]  }
  0x7a   :  { %570 = vmatprep.subr.bf16.mxu0 %v1103_v60  ;;  %s870_s21 = sshll.u32 %s1242_s6, 4  ;;  %s871_s21 = int_to_ptr.vmem [resolvable:$true] %s870_s21 }
  0x7b   :  { %p1211_p3 = scmp.lt.s32.totalorder %s871_s21, %s871_s21 }
  0x7d   :  { %571 = vmatpush1.bf16.msra.mxu0 %v1101_v61 }
  0x7e   :  { %572 = vmatprep.subr.bf16.mxu0 %v1106_v62 }
  0x81   :  { %573 = vmatpush1.bf16.msra.mxu0 %v1104_v63 }
  0x82   :  { %574 = vmatprep.subr.bf16.mxu0 %v1109_v0  ;;  %v970_v0 = vld [vmem:[%s1387_s7] ss:$0 sm:$0xff]  ;;  %s1206_s7 = scalar_lea.vmem %s871_s21, 128 }
  0x83   :  { %p1207_p2 = scmp.ne.s32.totalorder %s871_s21, %s1206_s7  ;;  %p1212_p4 = scmp.lt.s32.totalorder %s1206_s7, %s1206_s7 }
  0x85   :  { %575 = vmatpush1.bf16.msra.mxu0 %v1107_v1  ;;  %p1213_p5 = por %p1212_p4, %p1211_p3 }
  0x86   :  { %576 = vmatprep.subr.bf16.mxu0 %v1112_v2 }
  0x87   :  { %p1214_p6 = pnand %p1213_p5, %p1207_p2 }
  0x89   :  { %577 = vmatpush1.bf16.msra.mxu0 %v1110_v3 }
  0x8a   :  { %578 = vmatprep.subr.bf16.mxu0 %v1115_v4 }
  0x8d   :  { %579 = vmatpush1.bf16.msra.mxu0 %v1113_v5  ;;  %v855_v5 = vstv %s1388_s8 }
  0x8e   :  { %580 = vmatprep.subr.bf16.mxu0 %v1118_v6 }
  0x91   :  { %581 = vmatpush1.bf16.msra.mxu0 %v1116_v7 }
  0x92   :  { %582 = vmatprep.subr.bf16.mxu0 %v1121_v8 }
  0x95   :  { %583 = vmatpush1.bf16.msra.mxu0 %v1119_v9 }
  0x96   :  { %584 = vmatprep.subr.bf16.mxu0 %v1124_v10 }
  0x99   :  { %585 = vmatpush1.bf16.msra.mxu0 %v1122_v11 }
  0x9a   :  { %586 = vmatprep.subr.bf16.mxu0 %v1127_v12 }
  0x9d   :  { %587 = vmatpush1.bf16.msra.mxu0 %v1125_v13 }
  0x9e   :  { %588 = vmatprep.subr.bf16.mxu0 %v1130_v14 }
  0xa1   :  { %589 = vmatpush1.bf16.msra.mxu0 %v1128_v15 }
  0xa2   :  { %590 = vmatprep.subr.bf16.mxu0 %v1133_v16 }
  0xa5   :  { %591 = vmatpush1.bf16.msra.mxu0 %v1131_v17 }
  0xa8   :  { %593 = vmatmul.mubr.bf16.vlgmr.msra.gmra.mrb[0].mxu0 %v69_v19 }
 0x17b   :  { %v594_v32 = vpop.f32.mrb[0].mxu0 }
 0x17c   :  { %v1023_v33 = vadd.f32 %v594_v32, %v192_v30  ;;  %v596_v34 = vpop.f32.mrb[1].mxu0 }
 0x17d   :  { %v1024_v35 = vadd.f32 %v596_v34, %v196_v31  ;;  %v598_v36 = vpop.f32.mrb[2].mxu0 }
 0x17e   :  { %v601_v37 = vmax.f32 %v1023_v33, 0.0  ;;  %v599_v38 = vpop.f32.mrb[3].mxu0 }
 0x17f   :  { %v602_v39 = vmax.f32 %v1024_v35, 0.0 }
 0x180   :  { %v603_v42 = vpack.c.bf16 %v601_v37, %v601_v37 }
 0x181   :  { %v604_v40 = vpack.c.bf16 %v602_v39, %v602_v39 }
 0x183   :  { %739 = vmatprep.mubr.bf16.mxu1 %v604_v40 }
 0x184   :  { %740 = vmatmul.mubr.bf16.vlgmr.msra.gmra.mrb[0].mxu1 %v603_v42 }
 0x185   :  { %1004 = vmatpush3.bf16.msra.mxu1 %v1150_v41  ;;  %1019 = vmatprep.mubr.msk.bf16.mxu1 %vm1241_vm0, %v1240_v24 }
 0x186   :  { %1005 = vmatprep.subr.bf16.mxu1 %v1240_v24 }
 0x189   :  { %1006 = vmatpush3.bf16.msra.mxu1 %v1151_v43 }
 0x18a   :  { %1007 = vmatprep.subr.bf16.mxu1 %v1240_v24 }
 0x18d   :  { %1008 = vmatpush3.bf16.msra.mxu1 %v1152_v44 }
 0x18e   :  { %1009 = vmatprep.subr.bf16.mxu1 %v1240_v24 }
 0x191   :  { %1010 = vmatpush3.bf16.msra.mxu1 %v1153_v45 }
 0x192   :  { %1011 = vmatprep.subr.bf16.mxu1 %v1240_v24 }
 0x195   :  { %1012 = vmatpush3.bf16.msra.mxu1 %v1154_v46 }
 0x196   :  { %1013 = vmatprep.subr.bf16.mxu1 %v1240_v24 }
 0x199   :  { %1014 = vmatpush3.bf16.msra.mxu1 %v1155_v47 }
 0x19a   :  { %1015 = vmatprep.subr.bf16.mxu1 %v1240_v24 }
 0x19d   :  { %1016 = vmatpush3.bf16.msra.mxu1 %v1156_v48 }
 0x19e   :  { %1017 = vmatprep.subr.bf16.mxu1 %v1240_v24 }
 0x1a1   :  { %1018 = vmatpush3.bf16.msra.mxu1 %v1157_v49 }
 0x257   :  { %v988_v50 = vpop.f32.mrb[0].mxu1 }
 0x258   :  { %v989_v52 = vpop.f32.mrb[1].mxu1 }
 0x259   :  { %v990_v53 = vadd.f32 %v989_v52, %v988_v50  ;;  %v991_v54 = vpop.f32.mrb[2].mxu1 }
 0x25a   :  { %v992_v55 = vpop.f32.mrb[3].mxu1 }
 0x25b   :  { %v742_v56 = vadd.f32 %v990_v53, %v944_v51 }
 0x25d   :  { %v747_v57 = vmax.f32 %v742_v56, 0.0 }
 0x25f   :  { %v748_v58 = vpack.c.bf16 %v747_v57, %v747_v57 }
 0x261   :  { %1020 = vmatmul.mubr.bf16.vlgmr.msra.gmra.mrb[4].mxu1 %v748_v58 }
 0x334   :  { %v837_v60 = vpop.f32.mrb[4].mxu1 }
 0x335   :  { %v838_v61 = vadd.f32 %v961_v59, %v837_v60  ;;  %v1021_v62 = vpop.f32.mrb[5].mxu1 }
 0x336   :  { %v840_v63 = vpop.f32.mrb[6].mxu1 }
 0x337   :  { %v843_v1 = vmax.f32 %v838_v61, 0.0  ;;  %v1022_v2 = vpop.f32.mrb[7].mxu1 }
 0x339   :  { %v850_v3 = vmul.f32 %v970_v0, %v843_v1 }
 0x33b   :  { %v852_v4 = vsel %vm851_vm1, %v850_v3, 0.0 }
 0x33c   :  { %853 = vadd.xlane.f32.xlu0 %v852_v4 }
 0x3c9   :  { %v854_v6 = vpop.xlane.xlu0 %853 }
 0x3ca   :  { %v856_v7 = vadd.f32 %v855_v5, %v854_v6 }
 0x3cc   :  { %v971_v8 = vmul.f32 -1.442695, %v856_v7 }
 0x3ce   :  { %1158 = vpow2.f32 %v971_v8 }
 0x3d8   :  { %v1159_v9 = vpop.eup %1158 }
 0x3d9   :  { %v860_v10 = vadd.f32 1.0, %v1159_v9 }
 0x3db   :  { %1160 = vrcp.f32 %v860_v10 }
 0x3e5   :  { %v1161_v11 = vpop.eup %1160 }
 0x3e6   :  { %863 = vst [vmem:[#allocation8] sm:$0xff] %v1161_v11 }
 0x3e7   :  { %1217 = shalt.err (!%p1214_p6)
}
 0x3e8   :  { %s1218_s23 = scalar_lea.hbm %s1389_s9, 128 }
 0x3e9   :  { %p1219_p7 = scmp.ne.s32.totalorder %s1389_s9, %s1218_s23  ;;  %p1222_p8 = scmp.lt.u32.totalorder %s1218_s23, %s1389_s9 }
 0x3eb   :  { %p1224_p9 = pnand %p1222_p8, %p1219_p7 }
 0x3ed   :  { %1227 = shalt.err (!%p1224_p9)
}
 0x3ee   :  { %873 = dma.vmem_to_hbm [thread:$0]  %s871_s21, 128, %s1389_s9, [#allocation5]  }
 0x3ef   :  { %1232 = dma.done.wait [#allocation5], 128  }
 0x3f0   :  { %1233 = vsyncadd [#allocation5], 4294967168 }
 0x3f1   :  { %877 = vsyncpa [#allocation4], 1 }
 0x3f2   :  { %878 = vsyncpa [#allocation7], 1 }
 0x3f3   :  { %879 = vsyncpa [#allocation5], 1 }

</bundles_post_ra>
